<compile_context>
chip_gen: v7x
topology: tpu7x:2x2x1
jax: 0.10.0
libtpu: 0.0.40
codegen_flags: <defaults>
</compile_context>

<pallas_src>
import functools

import jax
import jax.numpy as jnp
from jax.experimental import pallas as pl
from jax.experimental.pallas import tpu as pltpu

LANE = 128
# Only bother splitting a would-be single-block launch (for multi-TC chips)
# when the tensor is at least this big.
_SPLIT_BYTES = 1 * 1024 * 1024


def _sublane(dtype):
    """Minimum second-minor tile for this dtype (8 f32, 16 bf16, 32 int8)."""
    return {1: 32, 2: 16}.get(jnp.dtype(dtype).itemsize, 8)


def _align_up(x, m):
    return ((x + m - 1) // m) * m


@functools.lru_cache(maxsize=1)
def _chip_config():
    """Per-generation tuning: (block_bytes, vmem_limit_bytes, min_grid)."""
    kind = ""
    try:
        kind = jax.devices()[0].device_kind.lower()
    except Exception:  # pragma: no cover - defensive, fall back to safe values
        pass
    if "v7" in kind:
        # ~3.2 TB/s HBM: bigger blocks amortize the ~0.35us/step fixed cost,
        # but only 64 MiB physical VMEM -> cap scoped limit at 48 MiB.
        # min_grid=2 so dimension_semantics=("parallel",) uses both TCs.
        return 6 * 1024 * 1024, 48 * 1024 * 1024, 2
    if "v6" in kind:
        # 128 MiB physical VMEM, ~1.4 TB/s: 6 MiB blocks, roomy 64 MiB limit.
        return 6 * 1024 * 1024, 64 * 1024 * 1024, 1
    # v5e (scoped default is only 16 MiB -> explicit 32 MiB override required)
    # and unknown chips: 2 MiB blocks sit on the measured roofline plateau.
    return 2 * 1024 * 1024, 32 * 1024 * 1024, 1


def _tile_rows(rows, dtype):
    """Row tile for a (rows, 128) view: capped at the per-chip block size."""
    block_bytes, _, min_grid = _chip_config()
    itemsize = jnp.dtype(dtype).itemsize
    sub = _sublane(dtype)
    cap = max(sub, (block_bytes // (LANE * itemsize)) // sub * sub)
    if rows > cap:
        return cap
    # Would be a single full-extent block.  On multi-TC chips split mid-sized
    # tensors in two so the "parallel" grid axis shards across TensorCores.
    if (min_grid >= 2 and rows >= 2 * sub
            and rows * LANE * itemsize >= _SPLIT_BYTES):
        return max(sub, _align_up(pl.cdiv(rows, min_grid), sub))
    return rows


# ----------------------------- kernel bodies ------------------------------ #

def _relu_kernel(x_ref, o_ref):
    o_ref[...] = jnp.maximum(x_ref[...], 0)


def _relu2_kernel(xh_ref, xl_ref, oh_ref, ol_ref):
    oh_ref[...] = jnp.maximum(xh_ref[...], 0)
    ol_ref[...] = jnp.maximum(xl_ref[...], 0)


# ---------------------------- pallas_call glue ----------------------------- #

def _relu_2d(x2d, tr, donate=False):
    """ReLU on a (R, 128) view with row tile `tr` (partial last block OK)."""
    R, C = x2d.shape
    _, vmem_limit, _ = _chip_config()
    nbytes = x2d.size * jnp.dtype(x2d.dtype).itemsize
    return pl.pallas_call(
        _relu_kernel,
        out_shape=jax.ShapeDtypeStruct((R, C), x2d.dtype),
        grid_spec=pltpu.PrefetchScalarGridSpec(
            num_scalar_prefetch=0,
            grid=(pl.cdiv(R, tr),),
            in_specs=[pl.BlockSpec((tr, C), lambda i: (i, 0))],
            out_specs=pl.BlockSpec((tr, C), lambda i: (i, 0)),
        ),
        compiler_params=pltpu.CompilerParams(
            dimension_semantics=("parallel",),
            vmem_limit_bytes=vmem_limit,
        ),
        cost_estimate=pl.CostEstimate(
            flops=x2d.size, transcendentals=0, bytes_accessed=2 * nbytes),
        input_output_aliases={0: 0} if donate else {},
    )(x2d)


def _fused_relu_2d(xh2d, xl2d, g, tr_h, tr_l, donate=False):
    """Single launch handling both streams under a shared 1-D grid."""
    Ch = xh2d.shape[1]
    Cl = xl2d.shape[1]
    _, vmem_limit, _ = _chip_config()
    nbytes = (xh2d.size * jnp.dtype(xh2d.dtype).itemsize
              + xl2d.size * jnp.dtype(xl2d.dtype).itemsize)
    return pl.pallas_call(
        _relu2_kernel,
        out_shape=(jax.ShapeDtypeStruct(xh2d.shape, xh2d.dtype),
                   jax.ShapeDtypeStruct(xl2d.shape, xl2d.dtype)),
        grid_spec=pltpu.PrefetchScalarGridSpec(
            num_scalar_prefetch=0,
            grid=(g,),
            in_specs=[pl.BlockSpec((tr_h, Ch), lambda i: (i, 0)),
                      pl.BlockSpec((tr_l, Cl), lambda i: (i, 0))],
            out_specs=[pl.BlockSpec((tr_h, Ch), lambda i: (i, 0)),
                       pl.BlockSpec((tr_l, Cl), lambda i: (i, 0))],
        ),
        compiler_params=pltpu.CompilerParams(
            dimension_semantics=("parallel",),
            vmem_limit_bytes=vmem_limit,
        ),
        cost_estimate=pl.CostEstimate(
            flops=xh2d.size + xl2d.size, transcendentals=0,
            bytes_accessed=2 * nbytes),
        input_output_aliases={0: 0, 1: 1} if donate else {},
    )(xh2d, xl2d)


def pallas_relu(x, donate=False):
    """ReLU on an arbitrary-shape array via a lane-dense (rows, 128) view."""
    n = x.size
    if n == 0:
        return x
    if n < LANE or n % LANE != 0:
        # Ragged element count: a slice+kernel+concatenate path would add up
        # to two extra full-tensor HBM passes; XLA's fused elementwise ReLU is
        # already at roofline for this case, so just use it.
        return jnp.maximum(x, 0)
    rows = n // LANE
    x2d = x.reshape(rows, LANE)
    y2d = _relu_2d(x2d, _tile_rows(rows, x.dtype), donate=donate)
    return y2d.reshape(x.shape)


def _try_fused(x_h, x_l, donate=False):
    """Fuse both streams into one pallas_call if a clean shared grid exists."""
    n_h, n_l = x_h.size, x_l.size
    if n_h == 0 or n_l == 0:
        return None
    if n_h % LANE or n_l % LANE:
        return None
    _, vmem_limit, _ = _chip_config()
    rows_h, rows_l = n_h // LANE, n_l // LANE
    sz_h = jnp.dtype(x_h.dtype).itemsize
    sz_l = jnp.dtype(x_l.dtype).itemsize
    sub_h, sub_l = _sublane(x_h.dtype), _sublane(x_l.dtype)

    # Shared grid size: enough steps that (a) each stream respects its own
    # per-stream block cap (incl. the v7x min-grid-of-2 rule) and (b) the
    # fused per-step VMEM footprint (in+out, double-buffered) fits the scoped
    # limit with headroom.
    g_h = pl.cdiv(rows_h, _tile_rows(rows_h, x_h.dtype))
    g_l = pl.cdiv(rows_l, _tile_rows(rows_l, x_l.dtype))
    fused_budget = max(vmem_limit - 4 * 1024 * 1024, 8 * 1024 * 1024)
    total_bytes = n_h * sz_h + n_l * sz_l
    g_budget = pl.cdiv(4 * total_bytes, fused_budget)
    g = max(g_h, g_l, g_budget)

    def fit(rows, sub):
        return rows if g == 1 else max(sub, _align_up(pl.cdiv(rows, g), sub))

    tr_h = fit(rows_h, sub_h)
    tr_l = fit(rows_l, sub_l)
    # Reject grids that would create fully out-of-bounds blocks for either
    # stream, or that blow the fused VMEM budget after sublane alignment; the
    # caller then falls back to two independent (still well-tiled) launches.
    if g > 1 and ((g - 1) * tr_h >= rows_h or (g - 1) * tr_l >= rows_l):
        return None
    if 4 * LANE * (tr_h * sz_h + tr_l * sz_l) > vmem_limit:
        return None

    yh2d, yl2d = _fused_relu_2d(
        x_h.reshape(rows_h, LANE), x_l.reshape(rows_l, LANE),
        g, tr_h, tr_l, donate=donate)
    return yh2d.reshape(x_h.shape), yl2d.reshape(x_l.shape)


def fs_relu_forward(x_h, x_l=None, *, donate=False):
    """Pallas equivalent of fs_relu.forward: elementwise ReLU on both streams.

    `donate=True` aliases outputs onto the input buffers (in-place ReLU, like
    nn.ReLU(inplace=True)) when the caller donates the activations.
    """
    if x_l is None:
        return pallas_relu(x_h, donate=donate), None
    fused = _try_fused(x_h, x_l, donate=donate)
    if fused is not None:
        return fused
    return pallas_relu(x_h, donate=donate), pallas_relu(x_l, donate=donate)


if __name__ == "__main__":
    key = jax.random.PRNGKey(0)
    k1, k2 = jax.random.split(key)
    # Octave-conv style: high-frequency stream NCHW [2,4,16,16],
    # low-frequency stream at half spatial resolution [2,4,8,8].
    x_h = jax.random.normal(k1, (2, 4, 16, 16), dtype=jnp.float32)
    x_l = jax.random.normal(k2, (2, 4, 8, 8), dtype=jnp.float32)
    ref_h = jnp.maximum(x_h, 0.0)
    ref_l = jnp.maximum(x_l, 0.0)

    y_h, y_l = fs_relu_forward(x_h, x_l)
    jax.block_until_ready(y_h)
    jax.block_until_ready(y_l)
    assert y_h.shape == x_h.shape and y_h.dtype == x_h.dtype
    assert y_l.shape == x_l.shape and y_l.dtype == x_l.dtype
    assert jnp.allclose(y_h, ref_h) and jnp.allclose(y_l, ref_l)

    # x_l=None branch (matches PyTorch semantics).
    y_h2, y_l2 = fs_relu_forward(x_h, None)
    jax.block_until_ready(y_h2)
    assert y_l2 is None and jnp.allclose(y_h2, ref_h)

    # In-place (donated) variant: output buffers alias the donated inputs.
    donate_fn = jax.jit(lambda a, b: fs_relu_forward(a, b, donate=True),
                        donate_argnums=(0, 1))
    y_hd, y_ld = donate_fn(x_h + 0.0, x_l + 0.0)
    jax.block_until_ready(y_hd)
    assert jnp.allclose(y_hd, ref_h) and jnp.allclose(y_ld, ref_l)

    # Larger shapes exercise the multi-block fused path (grid > 1 on every
    # supported generation, per-chip block caps, fused VMEM budget).
    k3, k4 = jax.random.split(k2)
    x_hb = jax.random.normal(k3, (2, 8, 512, 512), dtype=jnp.float32)
    x_lb = jax.random.normal(k4, (2, 8, 256, 256), dtype=jnp.float32)
    y_hb, y_lb = fs_relu_forward(x_hb, x_lb)
    jax.block_until_ready(y_hb)
    jax.block_until_ready(y_lb)
    assert jnp.allclose(y_hb, jnp.maximum(x_hb, 0.0))
    assert jnp.allclose(y_lb, jnp.maximum(x_lb, 0.0))

    # Non-multiple-of-128 element count exercises the plain-XLA fallback
    # (no extra HBM round-trips).
    x_odd = jax.random.normal(k3, (2, 3, 5, 7), dtype=jnp.float32)
    y_odd, _ = fs_relu_forward(x_odd, None)
    jax.block_until_ready(y_odd)
    assert jnp.allclose(y_odd, jnp.maximum(x_odd, 0.0))

    print("KERNEL_OK")
</pallas_src>

<mosaic_0001>
module attributes {stable_mosaic.version = 11 : i64} {
  func.func @_relu2_kernel(%arg0: i32, %arg1: memref<16x128xf32, #tpu.memory_space<vmem>>, %arg2: memref<4x128xf32, #tpu.memory_space<vmem>>, %arg3: memref<16x128xf32, #tpu.memory_space<vmem>>, %arg4: memref<4x128xf32, #tpu.memory_space<vmem>>) attributes {dimension_semantics = [#tpu.dimension_semantics<parallel>], iteration_bounds = array<i64: 1>, scalar_prefetch = 0 : i64, scratch_operands = 0 : i64, tpu.core_type = #tpu.core_type<tc>, window_params = [{transform_indices = @transform_0, window_bounds = array<i64: 16, 128>}, {transform_indices = @transform_1, window_bounds = array<i64: 4, 128>}, {transform_indices = @transform_2, window_bounds = array<i64: 16, 128>}, {transform_indices = @transform_3, window_bounds = array<i64: 4, 128>}]} {
    %c0 = arith.constant 0 : index
    %c0_0 = arith.constant 0 : index
    %0 = vector.load %arg1[%c0, %c0_0] : memref<16x128xf32, #tpu.memory_space<vmem>>, vector<16x128xf32>
    %cst = arith.constant 0.000000e+00 : f32
    %1 = vector.broadcast %cst : f32 to vector<16x128xf32>
    %2 = arith.maximumf %0, %1 : vector<16x128xf32>
    %c0_1 = arith.constant 0 : index
    %c0_2 = arith.constant 0 : index
    %3 = vector.load %arg3[%c0_1, %c0_2] : memref<16x128xf32, #tpu.memory_space<vmem>>, vector<16x128xf32>
    tpu.vector_store %arg3[%c0_1, %c0_2], %2 {strides = array<i32>} : memref<16x128xf32, #tpu.memory_space<vmem>>, vector<16x128xf32>,
    %c0_3 = arith.constant 0 : index
    %c0_4 = arith.constant 0 : index
    %4 = vector.load %arg2[%c0_3, %c0_4] : memref<4x128xf32, #tpu.memory_space<vmem>>, vector<4x128xf32>
    %cst_5 = arith.constant 0.000000e+00 : f32
    %5 = vector.broadcast %cst_5 : f32 to vector<4x128xf32>
    %6 = arith.maximumf %4, %5 : vector<4x128xf32>
    %c0_6 = arith.constant 0 : index
    %c0_7 = arith.constant 0 : index
    %7 = vector.load %arg4[%c0_6, %c0_7] : memref<4x128xf32, #tpu.memory_space<vmem>>, vector<4x128xf32>
    tpu.vector_store %arg4[%c0_6, %c0_7], %6 {strides = array<i32>} : memref<4x128xf32, #tpu.memory_space<vmem>>, vector<4x128xf32>,
    return
  }
  func.func @transform_0(%arg0: i32) -> (i32, i32) {
    %c0_i32 = arith.constant 0 : i32
    %c0_i32_0 = arith.constant 0 : i32
    return %arg0, %c0_i32 : i32, i32
  }
  func.func @transform_1(%arg0: i32) -> (i32, i32) {
    %c0_i32 = arith.constant 0 : i32
    %c0_i32_0 = arith.constant 0 : i32
    return %arg0, %c0_i32 : i32, i32
  }
  func.func @transform_2(%arg0: i32) -> (i32, i32) {
    %c0_i32 = arith.constant 0 : i32
    %c0_i32_0 = arith.constant 0 : i32
    return %arg0, %c0_i32 : i32, i32
  }
  func.func @transform_3(%arg0: i32) -> (i32, i32) {
    %c0_i32 = arith.constant 0 : i32
    %c0_i32_0 = arith.constant 0 : i32
    return %arg0, %c0_i32 : i32, i32
  }
}

</mosaic_0001>

<bundles_post_ra>
// kernel: tpu_custom_call.1
= control target key start
LH: loop header
LB: loop body
LE: loop exit
PB: predicated region body
PF: predicated region fallthrough
CT: control target
= control target key end

     0   :  { %9 = vsyncpa [#allocation3], 0  ;;  %s271_s0 = inlined_call_operand.hbm [shape: f32[16,128], index: 0, kind: input, shape index: {}]   ;;  %s272_s1 = inlined_call_operand.hbm [shape: f32[4,128], index: 1, kind: input, shape index: {}]   ;;  %s273_s2 = inlined_call_operand.hbm [shape: f32[16,128], index: 2, kind: output, shape index: {0}]   ;;  %s274_s3 = inlined_call_operand.hbm [shape: f32[4,128], index: 3, kind: output, shape index: {1}]  }
   0x1   :  { %10 = vsyncpa [#allocation6], 0 }
   0x2   :  { %11 = vsyncpa [#allocation4], 0 }
   0x3   :  { %12 = vsyncpa [#allocation9], 0  ;;  %s184_s12 = smov [#allocation2]   ;;  %s88_s16 = scalar_lea.hbm %s271_s0, 256 }
   0x4   :  { %s18_s13 = sshll.u32 %s184_s12, 4  ;;  %p89_p0 = scmp.ne.s32.totalorder %s271_s0, %s88_s16  ;;  %s19_s13 = int_to_ptr.vmem [resolvable:$true] %s18_s13 }
   0x5   :  { %p92_p1 = scmp.lt.u32.totalorder %s88_s16, %s271_s0 }
   0x7   :  { %p94_p2 = pnand %p92_p1, %p89_p0 }
   0x9   :  { %97 = shalt.err (!%p94_p2)
}
   0xa   :  { %s98_s21 = scalar_lea.vmem %s19_s13, 256  ;;  %p103_p4 = scmp.lt.s32.totalorder %s19_s13, %s19_s13 }
   0xb   :  { %p99_p3 = scmp.ne.s32.totalorder %s19_s13, %s98_s21  ;;  %p104_p5 = scmp.lt.s32.totalorder %s98_s21, %s98_s21 }
   0xd   :  { %p105_p6 = por %p104_p5, %p103_p4 }
   0xf   :  { %p106_p7 = pnand %p105_p6, %p99_p3 }
  0x11   :  { %109 = shalt.err (!%p106_p7)
}
  0x12   :  { %s185_s22 = smov 128   ;;  %s186_s23 = smov 8  }
  0x13   :  { %24 = dma.hbm_to_vmem [thread:$0]  %s271_s0, 256, %s19_s13, [#allocation3], %s185_s22, %s185_s22, %s186_s23  }
  0x14   :  { %s187_s26 = smov [#allocation5]   ;;  %s110_s30 = scalar_lea.hbm %s272_s1, 64 }
  0x15   :  { %s31_s27 = sshll.u32 %s187_s26, 4  ;;  %p111_p8 = scmp.ne.s32.totalorder %s272_s1, %s110_s30  ;;  %s32_s27 = int_to_ptr.vmem [resolvable:$true] %s31_s27 }
  0x16   :  { %p114_p9 = scmp.lt.u32.totalorder %s110_s30, %s272_s1 }
  0x18   :  { %p116_p10 = pnand %p114_p9, %p111_p8 }
  0x1a   :  { %119 = shalt.err (!%p116_p10)
}
  0x1b   :  { %s120_s8 = scalar_lea.vmem %s32_s27, 64  ;;  %p125_p12 = scmp.lt.s32.totalorder %s32_s27, %s32_s27 }
  0x1c   :  { %p121_p11 = scmp.ne.s32.totalorder %s32_s27, %s120_s8  ;;  %p126_p13 = scmp.lt.s32.totalorder %s120_s8, %s120_s8 }
  0x1e   :  { %p127_p0 = por %p126_p13, %p125_p12 }
  0x20   :  { %p128_p1 = pnand %p127_p0, %p121_p11 }
  0x22   :  { %131 = shalt.err (!%p128_p1)
}
  0x23   :  { %34 = dma.hbm_to_vmem [thread:$0]  %s272_s1, 64, %s32_s27, [#allocation6]  }
  0x24   :  { %176 = dma.done.wait [#allocation3], 256  }
  0x25   :  { %177 = vsyncadd [#allocation3], 4294967040 }
  0x26   :  { %178 = dma.done.wait [#allocation6], 64  }
  0x27   :  { %179 = vsyncadd [#allocation6], 4294967232  ;;  %s188_s10 = smov [#allocation7]   ;;  %s189_s12 = smov [#allocation8]   ;;  %v41_v0 = vld [vmem:[#allocation2] sm:$0xff]  ;;  %v42_v1 = vld [vmem:[#allocation2 + $0x8] sm:$0xff] }
  0x28   :  { %s55_s11 = sshll.u32 %s188_s10, 4  ;;  %s68_s13 = sshll.u32 %s189_s12, 4  ;;  %v47_v2 = vld [vmem:[#allocation5] sm:$0xf]  ;;  %v43_v3 = vmax.f32 %v41_v0, 0.0  ;;  %v44_v4 = vmax.f32 %v42_v1, 0.0  ;;  %s56_s11 = int_to_ptr.vmem [resolvable:$true] %s55_s11  ;;  %s237_s13 = int_to_ptr.vmem [resolvable:$true] %s68_s13 }
  0x29   :  { %v48_v5 = vmax.f32 %v47_v2, 0.0  ;;  %s132_s1 = scalar_lea.vmem %s56_s11, 256  ;;  %p137_p3 = scmp.lt.s32.totalorder %s56_s11, %s56_s11 }
  0x2a   :  { %45 = vst [vmem:[#allocation7] sm:$0xff] %v43_v3  ;;  %46 = vst [vmem:[#allocation7 + $0x8] sm:$0xff] %v44_v4  ;;  %p133_p2 = scmp.ne.s32.totalorder %s56_s11, %s132_s1  ;;  %p138_p4 = scmp.lt.s32.totalorder %s132_s1, %s132_s1 }
  0x2b   :  { %49 = vst [vmem:[#allocation8] sm:$0xf] %v48_v5 }
  0x2c   :  { %p139_p5 = por %p138_p4, %p137_p3 }
  0x2e   :  { %p140_p6 = pnand %p139_p5, %p133_p2 }
  0x30   :  { %143 = shalt.err (!%p140_p6)
}
  0x31   :  { %s144_s16 = scalar_lea.hbm %s273_s2, 256 }
  0x32   :  { %p145_p7 = scmp.ne.s32.totalorder %s273_s2, %s144_s16  ;;  %p148_p8 = scmp.lt.u32.totalorder %s144_s16, %s273_s2 }
  0x34   :  { %p150_p9 = pnand %p148_p8, %p145_p7 }
  0x36   :  { %153 = shalt.err (!%p150_p9)
}
  0x37   :  { %61 = dma.vmem_to_hbm [thread:$0]  %s56_s11, 256, %s273_s2, [#allocation4], %s185_s22, %s185_s22, %s186_s23  }
  0x38   :  { %s154_s25 = scalar_lea.vmem %s237_s13, 64  ;;  %p159_p11 = scmp.lt.s32.totalorder %s237_s13, %s237_s13 }
  0x39   :  { %p155_p10 = scmp.ne.s32.totalorder %s237_s13, %s154_s25  ;;  %p160_p12 = scmp.lt.s32.totalorder %s154_s25, %s154_s25 }
  0x3b   :  { %p161_p13 = por %p160_p12, %p159_p11 }
  0x3d   :  { %p162_p0 = pnand %p161_p13, %p155_p10 }
  0x3f   :  { %165 = shalt.err (!%p162_p0)
}
  0x40   :  { %s166_s28 = scalar_lea.hbm %s274_s3, 64 }
  0x41   :  { %p167_p1 = scmp.ne.s32.totalorder %s274_s3, %s166_s28  ;;  %p170_p2 = scmp.lt.u32.totalorder %s166_s28, %s274_s3 }
  0x43   :  { %p172_p3 = pnand %p170_p2, %p167_p1 }
  0x45   :  { %175 = shalt.err (!%p172_p3)
}
  0x46   :  { %71 = dma.vmem_to_hbm [thread:$0]  %s237_s13, 64, %s274_s3, [#allocation9]  }
  0x47   :  { %180 = dma.done.wait [#allocation4], 256  }
  0x48   :  { %181 = vsyncadd [#allocation4], 4294967040 }
  0x49   :  { %182 = dma.done.wait [#allocation9], 64  }
  0x4a   :  { %183 = vsyncadd [#allocation9], 4294967232 }
  0x4b   :  { %78 = vsyncpa [#allocation3], 1 }
  0x4c   :  { %79 = vsyncpa [#allocation6], 1 }
  0x4d   :  { %80 = vsyncpa [#allocation4], 1 }
  0x4e   :  { %81 = vsyncpa [#allocation9], 1 }

</bundles_post_ra>
